<compile_context>
chip_gen: v5e
topology: v5e:2x2
jax: 0.10.0
libtpu: 0.0.40
codegen_flags: <defaults>
</compile_context>

<pallas_src>
import jax
import jax.numpy as jnp
from jax.experimental import pallas as pl
from jax.experimental.pallas import tpu as pltpu


def _attention_kernel(g_ref, x_ref, wgxT_ref, w1_ref, o_ref):
    # g_ref:   (1, Cg, T)        x_ref: (1, Cx, T)
    # wgxT_ref:(Co, Cg+Cx)       w1_ref:(1, Co)
    # o_ref:   (1, Cx, T)
    g = g_ref[0]                                    # (Cg, T)
    x = x_ref[0]                                    # (Cx, T)

    # Stack g and x along channels (VMEM-local, tiny) so the two 1x1-conv
    # contractions become a single MXU dot over K = Cg + Cx.
    gx = jnp.concatenate([g, x], axis=0)            # (Cg+Cx, T)
    net = jnp.dot(wgxT_ref[...], gx,
                  preferred_element_type=jnp.float32)  # (Co, T)  == g1 + x1
    net = jnp.maximum(net, 0.0)                        # ReLU

    # 1-channel projection on the MXU (M=1 dot) instead of VPU/XLU reduce.
    a = jnp.dot(w1_ref[...], net,
                preferred_element_type=jnp.float32)    # (1, T)
    gate = jax.nn.sigmoid(a)                           # (1, T)

    out = gate * x.astype(jnp.float32)                 # (Cx, T), broadcast on sublanes
    o_ref[...] = out[None, :, :].astype(o_ref.dtype)


def _choose_spatial_tile(HW, N, *, t_sp_max, min_steps=8, lane=128):
    """Balanced, lane-aligned spatial tile with a minimum total step count."""
    n_from_cap = pl.cdiv(HW, t_sp_max)          # tiles implied by the size cap
    n_from_steps = pl.cdiv(min_steps, max(N, 1))  # tiles needed for >= min_steps
    n_sp = max(n_from_cap, n_from_steps, 1)
    t_sp = pl.cdiv(HW, n_sp)                    # balanced tile (avoids padded tail)
    t_sp = pl.cdiv(t_sp, lane) * lane           # lane-align
    if t_sp >= HW:                              # full extent is always legal
        t_sp = HW
    n_sp = pl.cdiv(HW, t_sp)
    return t_sp, n_sp


def attention_pallas(g, x, wg, wx, w, *, t_sp_max=16384, min_steps=8):
    """g: (N, Cg, H, W), x: (N, Cx, H, W) in NCHW (float32).
    wg: (Cg, Co), wx: (Cx, Co), w: (Co, 1)  -- 1x1 conv weights as matrices
    (PyTorch Conv2d weight (Co, Cin, 1, 1) squeezed+transposed to (Cin, Co)).
    Returns sigmoid(conv(relu(convg(g)+convx(x)))) * x, shape (N, Cx, H, W)."""
    N, Cg, H, W = g.shape
    Nx, Cx, Hx, Wx = x.shape
    assert (N, H, W) == (Nx, Hx, Wx)
    assert wg.shape[0] == Cg and wx.shape[0] == Cx and wg.shape[1] == wx.shape[1]
    Co = wg.shape[1]
    assert w.shape == (Co, 1)
    HW = H * W

    # Free reshapes: stay channel-major (no HBM transpose round trips).
    g3 = g.reshape(N, Cg, HW)
    x3 = x.reshape(N, Cx, HW)

    # Tiny one-time weight prep: fused (Co, Cg+Cx) contraction + (1, Co) gate.
    wgxT = jnp.concatenate([wg, wx], axis=0).T   # (Co, Cg+Cx)
    w1 = w.T                                     # (1, Co)

    t_sp, n_sp = _choose_spatial_tile(HW, N, t_sp_max=t_sp_max,
                                      min_steps=min_steps)

    # VMEM footprint estimate (double-buffered g/x/out tiles, sublane-padded
    # to 8 rows, plus live f32 temporaries) -> explicit scoped-VMEM limit.
    pad8 = lambda c: ((c + 7) // 8) * 8
    step_bytes = (
        2 * (pad8(Cg) + pad8(Cx)) * t_sp * 4     # 2-buffered input tiles
        + 2 * pad8(Cx) * t_sp * 4                # 2-buffered output tile
        + (pad8(Co) + 3 * 8) * t_sp * 4          # net + gx/gate/out temporaries
    )
    vmem_limit = int(min(max(2 * step_bytes, 16 << 20), 48 << 20))

    cost = pl.CostEstimate(
        flops=2 * (Cg + Cx + 1) * Co * N * HW,
        transcendentals=N * HW,
        bytes_accessed=(Cg + 2 * Cx) * N * HW * 4 + (Cg + Cx + 1) * Co * 4,
    )

    out3 = pl.pallas_call(
        _attention_kernel,
        out_shape=jax.ShapeDtypeStruct((N, Cx, HW), x.dtype),
        grid_spec=pltpu.PrefetchScalarGridSpec(
            num_scalar_prefetch=0,
            grid=(N, n_sp),
            in_specs=[
                pl.BlockSpec((1, Cg, t_sp), lambda n, s: (n, 0, s)),
                pl.BlockSpec((1, Cx, t_sp), lambda n, s: (n, 0, s)),
                pl.BlockSpec((Co, Cg + Cx), lambda n, s: (0, 0)),
                pl.BlockSpec((1, Co), lambda n, s: (0, 0)),
            ],
            out_specs=pl.BlockSpec((1, Cx, t_sp), lambda n, s: (n, 0, s)),
        ),
        compiler_params=pltpu.CompilerParams(
            dimension_semantics=("parallel", "parallel"),
            vmem_limit_bytes=vmem_limit),
        cost_estimate=cost,
    )(g3, x3, wgxT, w1)

    return out3.reshape(N, Cx, H, W)


def attention_ref(g, x, wg, wx, w):
    """Pure-JAX reference of the PyTorch forward (for sanity checking)."""
    g1 = jnp.einsum("nchw,co->nohw", g, wg)
    x1 = jnp.einsum("nchw,co->nohw", x, wx)
    net = jax.nn.relu(g1 + x1)
    a = jnp.einsum("nohw,oq->nqhw", net, w)   # q == 1
    gate = jax.nn.sigmoid(a)
    return gate * x


def _run_case(key, N, Cg, Cx, Co, H, W):
    kg, kx, kwg, kwx, kw = jax.random.split(key, 5)
    g = jax.random.normal(kg, (N, Cg, H, W), dtype=jnp.float32)
    x = jax.random.normal(kx, (N, Cx, H, W), dtype=jnp.float32)
    # PyTorch Conv2d weight shape is (out_ch, in_ch, 1, 1); we keep the
    # equivalent (in_ch, out_ch) matrices (bias=False in the module).
    wg = 0.1 * jax.random.normal(kwg, (Cg, Co), dtype=jnp.float32)
    wx = 0.1 * jax.random.normal(kwx, (Cx, Co), dtype=jnp.float32)
    w = 0.1 * jax.random.normal(kw, (Co, 1), dtype=jnp.float32)

    out = attention_pallas(g, x, wg, wx, w)
    out = jax.block_until_ready(out)
    ref = attention_ref(g, x, wg, wx, w)
    assert out.shape == (N, Cx, H, W)
    assert jnp.allclose(out, ref, atol=1e-5, rtol=1e-5)


if __name__ == "__main__":
    key = jax.random.PRNGKey(0)
    k0, k1 = jax.random.split(key)

    # Small shapes consistent with the module: ch_ing=4, ch_inx=4, ch_out=32.
    _run_case(k0, N=2, Cg=4, Cx=4, Co=32, H=16, W=16)
    # Ragged spatial extent (HW=324 not a multiple of the 128-wide tile) to
    # exercise the masked partial tail block.
    _run_case(k1, N=2, Cg=4, Cx=4, Co=32, H=18, W=18)

    print("KERNEL_OK")
</pallas_src>

<mosaic_0001>
module attributes {stable_mosaic.version = 11 : i64} {
  func.func @_attention_kernel(%arg0: i32, %arg1: i32, %arg2: memref<1x4x128xf32, #tpu.memory_space<vmem>>, %arg3: memref<1x4x128xf32, #tpu.memory_space<vmem>>, %arg4: memref<32x8xf32, #tpu.memory_space<vmem>>, %arg5: memref<1x32xf32, #tpu.memory_space<vmem>>, %arg6: memref<1x4x128xf32, #tpu.memory_space<vmem>>) attributes {dimension_semantics = [#tpu.dimension_semantics<parallel>, #tpu.dimension_semantics<parallel>], iteration_bounds = array<i64: 2, 2>, scalar_prefetch = 0 : i64, scratch_operands = 0 : i64, tpu.core_type = #tpu.core_type<tc>, window_params = [{transform_indices = @transform_0, window_bounds = array<i64: 1, 4, 128>}, {transform_indices = @transform_1, window_bounds = array<i64: 1, 4, 128>}, {pipeline_mode = #tpu.pipeline_mode<synchronous>, transform_indices = @transform_2, window_bounds = array<i64: 32, 8>}, {pipeline_mode = #tpu.pipeline_mode<synchronous>, transform_indices = @transform_3, window_bounds = array<i64: 1, 32>}, {transform_indices = @transform_4, window_bounds = array<i64: 1, 4, 128>}]} {
    %c0 = arith.constant 0 : index
    %c0_0 = arith.constant 0 : index
    %c0_1 = arith.constant 0 : index
    %0 = vector.load %arg2[%c0, %c0_0, %c0_1] : memref<1x4x128xf32, #tpu.memory_space<vmem>>, vector<1x4x128xf32>
    %1 = vector.shape_cast %0 : vector<1x4x128xf32> to vector<4x128xf32>
    %c0_2 = arith.constant 0 : index
    %c0_3 = arith.constant 0 : index
    %c0_4 = arith.constant 0 : index
    %2 = vector.load %arg3[%c0_2, %c0_3, %c0_4] : memref<1x4x128xf32, #tpu.memory_space<vmem>>, vector<1x4x128xf32>
    %3 = vector.shape_cast %2 : vector<1x4x128xf32> to vector<4x128xf32>
    %4 = tpu.concatenate %1, %3 in 0 : vector<4x128xf32>, vector<4x128xf32> -> vector<8x128xf32>
    %c0_5 = arith.constant 0 : index
    %c0_6 = arith.constant 0 : index
    %5 = vector.load %arg4[%c0_5, %c0_6] : memref<32x8xf32, #tpu.memory_space<vmem>>, vector<32x8xf32>
    %cst = arith.constant dense<0.000000e+00> : vector<32x128xf32>
    %6 = tpu.matmul %5, %4, %cst {dimension_numbers = #tpu.dot_dimension_numbers<[1], [0], [0], [1], [0, 0, 1, 1], [], []>} : vector<32x8xf32>, vector<8x128xf32>, vector<32x128xf32> -> vector<32x128xf32>
    %cst_7 = arith.constant 0.000000e+00 : f32
    %7 = vector.broadcast %cst_7 : f32 to vector<32x128xf32>
    %8 = arith.maximumf %6, %7 : vector<32x128xf32>
    %c0_8 = arith.constant 0 : index
    %c0_9 = arith.constant 0 : index
    %9 = vector.load %arg5[%c0_8, %c0_9] : memref<1x32xf32, #tpu.memory_space<vmem>>, vector<1x32xf32>
    %cst_10 = arith.constant dense<0.000000e+00> : vector<1x128xf32>
    %10 = tpu.matmul %9, %8, %cst_10 {dimension_numbers = #tpu.dot_dimension_numbers<[1], [0], [0], [1], [0, 0, 1, 1], [], []>} : vector<1x32xf32>, vector<32x128xf32>, vector<1x128xf32> -> vector<1x128xf32>
    %11 = arith.negf %10 : vector<1x128xf32>
    %12 = math.exp %11 : vector<1x128xf32>
    %cst_11 = arith.constant 1.000000e+00 : f32
    %13 = vector.broadcast %cst_11 : f32 to vector<1x128xf32>
    %14 = arith.addf %13, %12 : vector<1x128xf32>
    %15 = arith.divf %13, %14 : vector<1x128xf32>
    %16 = vector.broadcast %15 : vector<1x128xf32> to vector<4x128xf32>
    %17 = arith.mulf %16, %3 : vector<4x128xf32>
    %18 = vector.shape_cast %17 : vector<4x128xf32> to vector<1x4x128xf32>
    %c0_12 = arith.constant 0 : index
    %c0_13 = arith.constant 0 : index
    %c0_14 = arith.constant 0 : index
    %19 = vector.load %arg6[%c0_12, %c0_13, %c0_14] : memref<1x4x128xf32, #tpu.memory_space<vmem>>, vector<1x4x128xf32>
    tpu.vector_store %arg6[%c0_12, %c0_13, %c0_14], %18 {strides = array<i32>} : memref<1x4x128xf32, #tpu.memory_space<vmem>>, vector<1x4x128xf32>,
    return
  }
  func.func @transform_0(%arg0: i32, %arg1: i32) -> (i32, i32, i32) {
    %c0_i32 = arith.constant 0 : i32
    %c0_i32_0 = arith.constant 0 : i32
    return %arg0, %c0_i32, %arg1 : i32, i32, i32
  }
  func.func @transform_1(%arg0: i32, %arg1: i32) -> (i32, i32, i32) {
    %c0_i32 = arith.constant 0 : i32
    %c0_i32_0 = arith.constant 0 : i32
    return %arg0, %c0_i32, %arg1 : i32, i32, i32
  }
  func.func @transform_2(%arg0: i32, %arg1: i32) -> (i32, i32) {
    %c0_i32 = arith.constant 0 : i32
    %c0_i32_0 = arith.constant 0 : i32
    %c0_i32_1 = arith.constant 0 : i32
    return %c0_i32, %c0_i32_0 : i32, i32
  }
  func.func @transform_3(%arg0: i32, %arg1: i32) -> (i32, i32) {
    %c0_i32 = arith.constant 0 : i32
    %c0_i32_0 = arith.constant 0 : i32
    %c0_i32_1 = arith.constant 0 : i32
    return %c0_i32, %c0_i32_0 : i32, i32
  }
  func.func @transform_4(%arg0: i32, %arg1: i32) -> (i32, i32, i32) {
    %c0_i32 = arith.constant 0 : i32
    %c0_i32_0 = arith.constant 0 : i32
    return %arg0, %c0_i32, %arg1 : i32, i32, i32
  }
}

</mosaic_0001>

<bundles_post_ra>
// kernel: tpu_custom_call.1
= control target key start
LH: loop header
LB: loop body
LE: loop exit
PB: predicated region body
PF: predicated region fallthrough
CT: control target
= control target key end

     0   :  { %9 = vsyncpa [#allocation3], 0  ;;  %s829_s0 = inlined_call_operand.vmem [shape: f32[2,4,256], index: 0, kind: input, shape index: {}]   ;;  %s830_s1 = inlined_call_operand.vmem [shape: f32[2,4,256], index: 1, kind: input, shape index: {}]   ;;  %s831_s2 = inlined_call_operand.vmem [shape: f32[32,8], index: 2, kind: input, shape index: {}]   ;;  %s832_s3 = inlined_call_operand.vmem [shape: f32[1,32], index: 3, kind: input, shape index: {}]   ;;  %s833_s4 = inlined_call_operand.hbm [shape: f32[2,4,256], index: 4, kind: output, shape index: {}]  }
   0x1   :  { %11 = vsyncpa [#allocation3 + $0x1], 0  ;;  %s689_s15 = smov 0   ;;  %s691_s16 = smov 0  }
   0x2   :  { %s693_s17 = smov 0   ;;  %s695_s18 = smov 0  }
   0x3   :  { %s697_s19 = smov 0   ;;  %s699_s20 = smov 0  }
   0x4   :  { %s701_s21 = smov 0   ;;  %s703_s22 = smov 0  }
   0x5 LB: > { %s470_s23 = sadd.s32 4294967295, %s662_s22   ;;  %s471_s24 = sadd.s32 4294967294, %s662_s22   ;;  %s662_s22 = sphi %s703_s22, %s17_s22   ;;  %s658_s21 = sphi %s701_s21, %s842_s21   ;;  %s654_s20 = sphi %s699_s20, %s841_s20   ;;  %s650_s19 = sphi %s697_s19, %s840_s19   ;;  %s646_s18 = sphi %s695_s18, %s839_s18   ;;  %s642_s17 = sphi %s693_s17, %s838_s17   ;;  %s638_s16 = sphi %s691_s16, %s837_s16   ;;  %s634_s15 = sphi %s689_s15, %s836_s15  }
   0x6   : > { %s26_s25 = sadd.s32 1, %s654_s20  ;;  %s29_s26 = sadd.s32 1, %s658_s21 }
   0x7   : > { %p27_p0 = scmp.ge.s32.totalorder %s26_s25, 2  ;;  %p146_p1 = scmp.ne.s32.totalorder %s642_s17, %s638_s16 }
   0x8   : > { %p147_p2 = scmp.eq.s32.totalorder %s470_s23, 3  ;;  %p152_p5 = scmp.ne.s32.totalorder %s638_s16, %s634_s15 }
   0x9   : > { %s844_s25 = smov (%p27_p0, %s26_s25), 0  ;;  %s846_s26 = smov (!%p27_p0, %s29_s26), %s658_s21 }
   0xa   : > { %s132_s27 = ssub.s32 %s654_s20, %s844_s25  ;;  %p740_p3 = por %p147_p2, %p146_p1 }
   0xb   : > { %p31_p4 = scmp.ge.s32.totalorder %s846_s26, 2  ;;  %p153_p6 = scmp.eq.s32.totalorder %s471_s24, 3 }
   0xc   : > { %p474_p7 = scmp.ge.s32.totalorder %s662_s22, 1  ;;  %p199_p9 = scmp.lt.s32.totalorder %s662_s22, 5 }
   0xd   : > { %s848_s26 = smov (%p31_p4, %s846_s26), 0  ;;  %p749_p8 = por %p153_p6, %p152_p5 }
   0xe   : > { %s131_s30 = ssub.s32 %s658_s21, %s848_s26  ;;  %s136_s5 = sadd.s32 1, %s642_s17 }
   0xf   : > { %s133_s6 = sor.u32 %s132_s27, %s131_s30  ;;  %p200_p10 = pnand %p474_p7, %p199_p9 }
  0x10   : > { %p134_p11 = scmp.eq.s32.totalorder %s133_s6, 0  ;;  %p236_p12 = scmp.lt.s32.totalorder (!%p200_p10), %s650_s19, 1 }
  0x11   : > { %203 = sbr.rel (%p200_p10) target bundleno = 342 (0x156), region = 36  ;;  %p238_p13 = scmp.lt.s32.totalorder (!%p200_p10), %s646_s18, 1 }
  0x12   : > { %s758_s7 = scalar_select %p134_p11, %s642_s17, %s136_s5  }
  0x13   : > { %s487_s24 = sshll.u32 (!%p200_p10), %s650_s19, 1  ;;  %s233_s27 = sand.u32 (!%p200_p10), 1, %s638_s16  }
  0x14   : > { %s475_s5 = sshll.u32 (!%p200_p10), %s233_s27, 2 }
  0x16   : > { %s237_s8 = scalar_select %p236_p12, %s650_s19, 1  ;;  %vm257_vm0 = vcmask 1043456   ;;  %v260_v3 = vld [vmem:[%s831_s2 + $0x8] sm:$0xff]  ;;  %vm263_vm1 = vcmask 64512   ;;  %v262_v4 = vld [vmem:[%s831_s2 + $0x18] sm:$0xff]  ;;  %v259_v6 = vld [vmem:[%s831_s2] sm:$0xff] }
  0x17   : > { %s239_s9 = scalar_select %p238_p13, %s646_s18, 1  ;;  %v261_v7 = vld [vmem:[%s831_s2 + $0x10] sm:$0xff]  ;;  %v309_v16 = vld [vmem:[%s832_s3] sm:$0x1]  ;;  %vm310_vm2 = vcmask 261120  }
  0x18   : > { %s476_s10 = sshll.u32 %s237_s8, 1 }
  0x19   : > { %s241_s11 = sadd.s32 %s476_s10, %s239_s9 }
  0x1a   : > { %s477_s12 = sshll.u32 %s241_s11, 2 }
  0x1b   : > { %s243_s23 = scalar_lea.vmem %s829_s0, %s477_s12  ;;  %s251_s30 = scalar_lea.vmem %s830_s1, %s477_s12 }
  0x1c   : > { %v252_v0 = vld [vmem:[%s243_s23] sm:$0xf]  ;;  %s357_s12 = scalar_lea.sflag [#allocation3], %s233_s27 }
  0x1d   : > { %v253_v1 = vld [vmem:[%s251_s30] sm:$0xf]  ;;  %s367_s30 = sadd.s32 %s646_s18, %s487_s24  ;;  %s235_s18 = scalar_lea.vmem [#allocation2], %s475_s5 }
  0x1e   : > { %v255_v2 = vrot.slane %v253_v1, 4  ;;  %s488_s6 = sshll.u32 %s367_s30, 2  ;;  %s371_s19 = sshll.u32 %s235_s18, 4  ;;  %s372_s19 = int_to_ptr.vmem [resolvable:$true] %s371_s19 }
  0x1f   : > { %s369_s10 = scalar_lea.hbm %s833_s4, %s488_s6  ;;  %s588_s30 = scalar_lea.hbm %s833_s4, 16 }
  0x20   : > { %v258_v5 = vsel %vm257_vm0, %v252_v0, %v255_v2  ;;  %s373_s11 = sshll.u32 %s369_s10, 4  ;;  %s374_s11 = int_to_ptr.hbm [resolvable:$true] %s373_s11 }
  0x21   : > { %491 = vmatpush.msra.mxu2 %v258_v5  ;;  %492 = vmatpush.msra.mxu3 %v258_v5  ;;  %s582_s13 = sshra.s32 %s374_s11, 4  ;;  %s583_s13 = int_to_ptr.hbm [resolvable:$true] %s582_s13 }
  0x22   : > { %481 = vmatmul.msk.f32.vlgmr.msra.gmra.mxu2 %vm263_vm1, %v260_v3  ;;  %483 = vmatmul.msk.f32.vlgmr.msra.gmra.mxu3 %vm263_vm1, %v262_v4  ;;  %s584_s14 = scalar_lea.hbm %s583_s13, 4  ;;  %p589_p4 = scmp.lt.s32.totalorder %s583_s13, %s833_s4 }
  0x23   : > { %291 = vmatpush.msra.mxu0 %v258_v5  ;;  %p585_p0 = scmp.ne.s32.totalorder %s583_s13, %s584_s14  ;;  %p590_p5 = scmp.lt.s32.totalorder %s588_s30, %s584_s14 }
  0x24   : > { %480 = vmatmul.msk.f32.vlgmr.msra.gmra.mxu0 %vm263_vm1, %v259_v6 }
  0x25   : > { %p586_p1 = pnand %p585_p0, %p740_p3  ;;  %p591_p6 = por %p590_p5, %p589_p4 }
  0x27   : > { %p587_p2 = pneg %p586_p1 }
  0x29   : > { %p592_p7 = pnand %p591_p6, %p587_p2 }
  0x2a   : > { %482 = vmatmul.msk.f32.gmra.mxu2 %vm263_vm1, %v261_v7 }
  0xa1   : > { %v293_v12 = vpop.f32.mrf.mxu0 }
  0xa2   : > { %v305_v15 = vmax.f32 %v293_v12, 0.0 }
  0xa5   : > { %v296_v8 = vpop.f32.mrf.mxu2  ;;  %v302_v9 = vpop.f32.mrf.mxu3 }
  0xa6   : > { %v308_v10 = vmax.f32 %v302_v9, 0.0  ;;  %v306_v14 = vmax.f32 %v296_v8, 0.0 }
  0xa8   : > { %326 = vmatpush.msra.mxu1 %v308_v10 }
  0xad   : > { %v299_v11 = vpop.f32.mrf.mxu2 }
  0xae   : > { %v307_v13 = vmax.f32 %v299_v11, 0.0 }
  0xb0   : > { %327 = vmatpush.msra.mxu1 %v307_v13 }
  0xb2   : > { %328 = vmatpush.msra.mxu1 %v306_v14 }
  0xb4   : > { %329 = vmatpush.msra.mxu1 %v305_v15 }
  0xb5   : > { %484 = vmatmul.msk.f32.vlgmr.msra.gmra.mxu1 %vm310_vm2, %v309_v16 }
 0x132   : > { %v331_v17 = vpop.f32.mrf.mxu1 }
 0x133   : > { %v485_v18 = vmul.f32 -1.442695, %v331_v17 }
 0x135   : > { %564 = vpow2.f32 %v485_v18 }
 0x13b   : > { %v565_v19 = vpop.eup %564 }
 0x13c   : > { %v337_v20 = vadd.f32 1.0, %v565_v19 }
 0x13e   : > { %566 = vrcp.f32 %v337_v20  ;;  %v349_v24 = vand.u32 2147483648, %v337_v20  ;;  %v347_v26 = vand.u32 2147483647, %v337_v20  ;;  %vm343_vm4 = vweird.f32 %v337_v20 }
 0x140   : > { %v350_v28 = vor.u32 1.1754944e-38, %v349_v24  ;;  %vm348_vm6 = vcmp.eq.f32.partialorder %v347_v26, 8.507059e+37 }
 0x144   : > { %v567_v21 = vpop.eup %566 }
 0x145   : > { %v339_v22 = vmul.f32 %v567_v21, %v337_v20  ;;  %vm344_vm3 = vweird.f32 %v567_v21 }
 0x146   : > { %vm345_vm5 = vmor %vm343_vm4, %vm344_vm3 }
 0x147   : > { %v340_v23 = vsub.f32 1.0, %v339_v22 }
 0x149   : > { %v341_v25 = vmul.f32 %v567_v21, %v340_v23 }
 0x14b   : > { %v342_v27 = vadd.f32 %v567_v21, %v341_v25 }
 0x14d   : > { %v346_v29 = vsel %vm345_vm5, %v567_v21, %v342_v27 }
 0x14e   : > { %v351_v30 = vsel %vm348_vm6, %v350_v28, %v346_v29 }
 0x14f   : > { %v353_v31 = vperm.slane %v351_v30, 0 }
 0x151   : > { %v354_v32 = vmul.f32 %v353_v31, %v253_v1 }
 0x153   : > { %355 = vst [vmem:[%s235_s18] sm:$0xf] %v354_v32 }
 0x154   : > { %595 = shalt.err (!%p592_p7)
}
 0x155   : > { %493 = dma.vmem_to_hbm [thread:$0]  (%p740_p3), %s372_s19, 64, %s374_s11, %s357_s12  }
 0x156 PF: > { %p499_p9 = scmp.ge.s32.totalorder %s662_s22, 2  ;;  %s385_s27 = sand.u32 1, %s634_s15  }
 0x157   : > { %s386_s8 = scalar_lea.sflag [#allocation3], %s385_s27 }
 0x158   : > { %p496_p10 = pnand %p499_p9, %p749_p8 }
 0x15a   : > { %p497_p11 = pneg %p496_p10 }
 0x15c   : > { %629 = dma.done.wait (%p497_p11), %s386_s8, 64  }
 0x15d   : > { %631 = vsyncadd (%p497_p11), %s386_s8, 4294967232  ;;  %s17_s22 = sadd.s32 1, %s662_s22   ;;  %s836_s15 = smov %s638_s16 }
 0x15e   : > { %p14_p12 = scmp.ge.s32.totalorder %s17_s22, 6   ;;  %s837_s16 = smov %s642_s17 }
 0x15f   : > { %s838_s17 = smov %s758_s7  ;;  %s839_s18 = smov %s654_s20 }
 0x160   : > { %s840_s19 = smov %s658_s21  ;;  %s841_s20 = smov %s844_s25 }
 0x161   : > { %s842_s21 = smov %s848_s26  ;;  %16 = sbr.rel (!%p14_p12) target bundleno = 5 (0x5), region = 74 }
 0x166   :  { %392 = vsyncpa [#allocation3], 1 }
 0x167   :  { %394 = vsyncpa [#allocation3 + $0x1], 1 }

</bundles_post_ra>
